<compile_context>
chip_gen: v7x
topology: tpu7x:2x2x1
jax: 0.10.0
libtpu: 0.0.40
codegen_flags: <defaults>
</compile_context>

<pallas_src>
import functools

import jax
import jax.numpy as jnp
from jax.experimental import pallas as pl
from jax.experimental.pallas import tpu as pltpu


def _wce_fused_kernel(x_ref, t_ref, s_ref, a_ref, v_ref, *,
                      ignore_index, hw_total, tile_s, steps_per_chunk):
    """Fused per-class partial sums: softmax-prob sums, NLL partials, counts."""
    ci = pl.program_id(1)     # parallel spatial chunk
    si = pl.program_id(2)     # reduction step inside the chunk

    @pl.when(si == 0)
    def _():
        s_ref[...] = jnp.zeros_like(s_ref)
        a_ref[...] = jnp.zeros_like(a_ref)
        v_ref[...] = jnp.zeros_like(v_ref)

    x = x_ref[0].astype(jnp.float32)        # (C, TS) channels-first, lane-dense
    t = t_ref[0]                            # (1, TS) int32 targets

    # Global spatial offset of this tile; mask ragged / out-of-range columns.
    # Masking x itself guarantees garbage in the ragged last block can never
    # poison lse / nll (avoids 0 * NaN), without any wrapper-side padding.
    col0 = (ci * steps_per_chunk + si) * tile_s
    col = jax.lax.broadcasted_iota(jnp.int32, (1, tile_s), 1)
    col_ok = col < (hw_total - col0)                            # (1, TS)
    x = jnp.where(col_ok, x, 0.0)

    # numerically-stable softmax / log-sum-exp along the (small) class axis
    mx = jnp.max(x, axis=0, keepdims=True)                      # (1, TS)
    e = jnp.exp(x - mx)                                         # (C, TS)
    denom = jnp.sum(e, axis=0, keepdims=True)                   # (1, TS)
    lse = mx + jnp.log(denom)                                   # (1, TS)
    # exact reciprocal (EUP slot); masked columns contribute 0 to S_c
    p = jnp.where(col_ok, e * pl.reciprocal(denom), 0.0)        # (C, TS)

    cls = jax.lax.broadcasted_iota(jnp.int32, x.shape, 0)       # (C, TS)
    valid = jnp.logical_and(t != ignore_index, col_ok)          # (1, TS)
    onehot = jnp.logical_and(cls == t, valid).astype(jnp.float32)  # (C, TS)

    # per-class partial accumulators (reduce over the lane/spatial axis);
    # NLL partial fused: sum_c onehot[c,i]*(lse_i - x[c,i]) = valid_i * nll_i
    s_ref[0] += jnp.sum(p, axis=1, keepdims=True)               # (C, 1)
    a_ref[0] += jnp.sum(onehot * (lse - x), axis=1, keepdims=True)
    v_ref[0] += jnp.sum(onehot, axis=1, keepdims=True)


def weighted_cross_entropy_loss(logits_nchw, target_nhw, ignore_index=-1,
                                spatial_chunks=2,
                                target_tile_bytes=2 * 1024 * 1024,
                                vmem_tile_budget=40 * 1024 * 1024):
    N, C, H, W = logits_nchw.shape
    HW = H * W

    # channels-first view: free reshape of the contiguous NCHW tensor,
    # no transpose, no pad, no wrapper-side upcast (kernel casts on load).
    x = logits_nchw.reshape(N, C, HW)
    t = target_nhw.reshape(N, 1, HW).astype(jnp.int32)

    # Lane-dense spatial tile, sized in bytes:
    #  * target ~2 MiB of f32-equivalent logits per tile (bandwidth vs.
    #    per-grid-step-overhead sweet spot),
    #  * hard VMEM cap covering double-buffered inputs + ~7x(C,TS) f32
    #    intermediates (keeps the kernel safe on v7x's 64 MiB VMEM),
    #  * allow >= spatial_chunks chunks when HW is large enough so both
    #    v7x TensorCores get work even for N == 1.
    itemsize = jnp.dtype(x.dtype).itemsize
    spatial_chunks = max(1, int(spatial_chunks))
    ts_target = max(128, (target_tile_bytes // (4 * C)) // 128 * 128)
    per_col_bytes = C * (2 * itemsize + 28) + 2 * 4
    ts_vmem = max(128, (vmem_tile_budget // per_col_bytes) // 128 * 128)
    hw_chunk = pl.cdiv(pl.cdiv(HW, spatial_chunks), 128) * 128
    ts = max(128, min(ts_target, ts_vmem, hw_chunk))

    ns = pl.cdiv(HW, ts)                     # spatial blocks (last may be ragged)
    spc = pl.cdiv(ns, spatial_chunks)        # inner (reduction) steps per chunk
    n_chunks = pl.cdiv(ns, spc)              # effective parallel chunks
    last_blk = ns - 1

    grid = (N, n_chunks, spc)

    def xt_map(n, c, si):
        # Clamp to the last valid block: a fully-out-of-range step re-reads a
        # valid block and contributes exactly zero (column mask in-kernel).
        return (n, 0, jnp.minimum(c * spc + si, last_blk))

    def out_map(n, c, si):
        return (n * n_chunks + c, 0, 0)

    s, a, v = pl.pallas_call(
        functools.partial(_wce_fused_kernel, ignore_index=ignore_index,
                          hw_total=HW, tile_s=ts, steps_per_chunk=spc),
        out_shape=(jax.ShapeDtypeStruct((N * n_chunks, C, 1), jnp.float32),
                   jax.ShapeDtypeStruct((N * n_chunks, C, 1), jnp.float32),
                   jax.ShapeDtypeStruct((N * n_chunks, C, 1), jnp.float32)),
        grid_spec=pltpu.PrefetchScalarGridSpec(
            num_scalar_prefetch=0,
            grid=grid,
            in_specs=[pl.BlockSpec((1, C, ts), xt_map),
                      pl.BlockSpec((1, 1, ts), xt_map)],
            out_specs=(pl.BlockSpec((1, C, 1), out_map),
                       pl.BlockSpec((1, C, 1), out_map),
                       pl.BlockSpec((1, C, 1), out_map)),
        ),
        compiler_params=pltpu.CompilerParams(
            # batch and spatial-chunk axes parallel (megacore / v7x 2-TC
            # split even for N == 1), inner reduction axis arbitrary
            # (accumulator residency).
            dimension_semantics=("parallel", "parallel", "arbitrary"),
            vmem_limit_bytes=48 * 1024 * 1024),
    )(x, t)

    # combine per-(batch, chunk) partials and finish the (linear-in-w)
    # reduction in plain JAX.
    S = jnp.sum(s[:, :, 0], axis=0)          # (C,) per-class softmax-prob sums
    A = jnp.sum(a[:, :, 0], axis=0)          # (C,) per-class NLL partials
    V = jnp.sum(v[:, :, 0], axis=0)          # (C,) per-class valid counts

    M = jnp.float32(N * HW)
    w = (M - S) / S                          # class weights (M - S_c)/S_c
    num = jnp.sum(w * A)
    den = jnp.sum(w * V)
    return num / den


def _reference_wce(logits_nchw, target_nhw, ignore_index=-1):
    """Pure-JAX reference matching torch.nn.functional.cross_entropy semantics."""
    N, C, H, W = logits_nchw.shape
    x = jnp.transpose(logits_nchw, (0, 2, 3, 1)).reshape(-1, C).astype(jnp.float32)
    t = target_nhw.reshape(-1).astype(jnp.int32)
    p = jax.nn.softmax(x, axis=-1)
    S = p.sum(axis=0)
    w = (x.shape[0] - S) / S
    logp = jax.nn.log_softmax(x, axis=-1)
    valid = t != ignore_index
    t_safe = jnp.where(valid, t, 0)
    nll = -jnp.take_along_axis(logp, t_safe[:, None], axis=-1)[:, 0]
    wt = w[t_safe] * valid.astype(jnp.float32)
    return jnp.sum(wt * nll) / jnp.sum(wt)


if __name__ == "__main__":
    key = jax.random.PRNGKey(0)
    k_x, k_t, k_m, k_x2, k_t2, k_m2 = jax.random.split(key, 6)

    # primary config (tile-aligned spatial extent)
    N, C, H, W = 2, 4, 16, 16
    logits = jax.random.normal(k_x, (N, C, H, W), dtype=jnp.float32)
    target = jax.random.randint(k_t, (N, H, W), 0, C, dtype=jnp.int32)
    ignore_mask = jax.random.bernoulli(k_m, 0.1, (N, H, W))
    target = jnp.where(ignore_mask, -1, target)

    loss = jax.block_until_ready(
        weighted_cross_entropy_loss(logits, target, ignore_index=-1))
    ref = _reference_wce(logits, target, ignore_index=-1)
    assert jnp.allclose(loss, ref, rtol=1e-5, atol=1e-5), (loss, ref)

    # ragged config (H*W not a multiple of 128, odd class count) -- exercises
    # the in-kernel column masking that replaced the wrapper jnp.pad.
    N2, C2, H2, W2 = 2, 5, 15, 17
    logits2 = jax.random.normal(k_x2, (N2, C2, H2, W2), dtype=jnp.float32)
    target2 = jax.random.randint(k_t2, (N2, H2, W2), 0, C2, dtype=jnp.int32)
    ignore_mask2 = jax.random.bernoulli(k_m2, 0.1, (N2, H2, W2))
    target2 = jnp.where(ignore_mask2, -1, target2)

    loss2 = jax.block_until_ready(
        weighted_cross_entropy_loss(logits2, target2, ignore_index=-1))
    ref2 = _reference_wce(logits2, target2, ignore_index=-1)
    assert jnp.allclose(loss2, ref2, rtol=1e-5, atol=1e-5), (loss2, ref2)

    print("KERNEL_OK")
</pallas_src>

<mosaic_0001>
module attributes {stable_mosaic.version = 11 : i64} {
  func.func @_wce_fused_kernel(%arg0: i32, %arg1: i32, %arg2: i32, %arg3: memref<1x4x128xf32, #tpu.memory_space<vmem>>, %arg4: memref<1x1x128xi32, #tpu.memory_space<vmem>>, %arg5: memref<1x4x1xf32, #tpu.memory_space<vmem>>, %arg6: memref<1x4x1xf32, #tpu.memory_space<vmem>>, %arg7: memref<1x4x1xf32, #tpu.memory_space<vmem>>) attributes {dimension_semantics = [#tpu.dimension_semantics<parallel>, #tpu.dimension_semantics<parallel>, #tpu.dimension_semantics<arbitrary>], iteration_bounds = array<i64: 2, 2, 1>, scalar_prefetch = 0 : i64, scratch_operands = 0 : i64, tpu.core_type = #tpu.core_type<tc>, window_params = [{transform_indices = @transform_0, window_bounds = array<i64: 1, 4, 128>}, {transform_indices = @transform_1, window_bounds = array<i64: 1, 1, 128>}, {transform_indices = @transform_2, window_bounds = array<i64: 1, 4, 1>}, {transform_indices = @transform_3, window_bounds = array<i64: 1, 4, 1>}, {transform_indices = @transform_4, window_bounds = array<i64: 1, 4, 1>}]} {
    %c0_i32 = arith.constant 0 : i32
    %0 = arith.cmpi eq, %arg2, %c0_i32 : i32
    %1 = arith.extui %0 : i1 to i32
    %c0_i32_0 = arith.constant 0 : i32
    %2 = arith.cmpi ne, %1, %c0_i32_0 : i32
    scf.if %2 {
      %cst_30 = arith.constant 0.000000e+00 : f32
      %71 = vector.broadcast %cst_30 : f32 to vector<1x4x1xf32>
      %c0_31 = arith.constant 0 : index
      %c0_32 = arith.constant 0 : index
      %c0_33 = arith.constant 0 : index
      %72 = vector.load %arg5[%c0_31, %c0_32, %c0_33] : memref<1x4x1xf32, #tpu.memory_space<vmem>>, vector<1x4x1xf32>
      tpu.vector_store %arg5[%c0_31, %c0_32, %c0_33], %71 {strides = array<i32>} : memref<1x4x1xf32, #tpu.memory_space<vmem>>, vector<1x4x1xf32>,
      %cst_34 = arith.constant 0.000000e+00 : f32
      %73 = vector.broadcast %cst_34 : f32 to vector<1x4x1xf32>
      %c0_35 = arith.constant 0 : index
      %c0_36 = arith.constant 0 : index
      %c0_37 = arith.constant 0 : index
      %74 = vector.load %arg6[%c0_35, %c0_36, %c0_37] : memref<1x4x1xf32, #tpu.memory_space<vmem>>, vector<1x4x1xf32>
      tpu.vector_store %arg6[%c0_35, %c0_36, %c0_37], %73 {strides = array<i32>} : memref<1x4x1xf32, #tpu.memory_space<vmem>>, vector<1x4x1xf32>,
      %cst_38 = arith.constant 0.000000e+00 : f32
      %75 = vector.broadcast %cst_38 : f32 to vector<1x4x1xf32>
      %c0_39 = arith.constant 0 : index
      %c0_40 = arith.constant 0 : index
      %c0_41 = arith.constant 0 : index
      %76 = vector.load %arg7[%c0_39, %c0_40, %c0_41] : memref<1x4x1xf32, #tpu.memory_space<vmem>>, vector<1x4x1xf32>
      tpu.vector_store %arg7[%c0_39, %c0_40, %c0_41], %75 {strides = array<i32>} : memref<1x4x1xf32, #tpu.memory_space<vmem>>, vector<1x4x1xf32>,
    } else {
    }
    %c0 = arith.constant 0 : index
    %c0_1 = arith.constant 0 : index
    %c0_2 = arith.constant 0 : index
    %3 = vector.load %arg3[%c0, %c0_1, %c0_2] : memref<1x4x128xf32, #tpu.memory_space<vmem>>, vector<1x4x128xf32>
    %4 = vector.shape_cast %3 : vector<1x4x128xf32> to vector<4x128xf32>
    %c0_3 = arith.constant 0 : index
    %c0_4 = arith.constant 0 : index
    %c0_5 = arith.constant 0 : index
    %5 = vector.load %arg4[%c0_3, %c0_4, %c0_5] : memref<1x1x128xi32, #tpu.memory_space<vmem>>, vector<1x1x128xi32>
    %6 = vector.shape_cast %5 : vector<1x1x128xi32> to vector<1x128xi32>
    %c1_i32 = arith.constant 1 : i32
    %7 = arith.muli %arg1, %c1_i32 : i32
    %8 = arith.addi %7, %arg2 : i32
    %c128_i32 = arith.constant 128 : i32
    %9 = arith.muli %8, %c128_i32 : i32
    %10 = tpu.iota {dimensions = array<i32: 1>} : vector<1x128xi32>
    %c256_i32 = arith.constant 256 : i32
    %11 = arith.subi %c256_i32, %9 : i32
    %12 = vector.broadcast %11 : i32 to vector<1x128xi32>
    %13 = arith.cmpi slt, %10, %12 : vector<1x128xi32>
    %cst = arith.constant 0.000000e+00 : f32
    %14 = vector.shape_cast %13 : vector<1x128xi1> to vector<1x128xi1>
    %15 = vector.broadcast %14 : vector<1x128xi1> to vector<4x128xi1>
    %16 = vector.broadcast %cst : f32 to vector<4x128xf32>
    %17 = arith.select %15, %4, %16 : vector<4x128xi1>, vector<4x128xf32>
    %cst_6 = arith.constant dense<0xFF800000> : vector<128xf32>
    %18 = vector.multi_reduction <maximumf>, %17, %cst_6 [0] : vector<4x128xf32> to vector<128xf32>
    %19 = vector.shape_cast %18 : vector<128xf32> to vector<1x128xf32>
    %20 = vector.broadcast %19 : vector<1x128xf32> to vector<4x128xf32>
    %21 = arith.subf %17, %20 : vector<4x128xf32>
    %22 = math.exp %21 : vector<4x128xf32>
    %cst_7 = arith.constant dense<0.000000e+00> : vector<128xf32>
    %23 = vector.multi_reduction <add>, %22, %cst_7 [0] : vector<4x128xf32> to vector<128xf32>
    %24 = vector.shape_cast %23 : vector<128xf32> to vector<1x128xf32>
    %25 = math.log %24 : vector<1x128xf32>
    %26 = arith.addf %19, %25 : vector<1x128xf32>
    %27 = tpu.reciprocal %24 : vector<1x128xf32> -> vector<1x128xf32>
    %28 = vector.broadcast %27 : vector<1x128xf32> to vector<4x128xf32>
    %29 = arith.mulf %22, %28 : vector<4x128xf32>
    %cst_8 = arith.constant 0.000000e+00 : f32
    %30 = vector.shape_cast %13 : vector<1x128xi1> to vector<1x128xi1>
    %31 = vector.broadcast %30 : vector<1x128xi1> to vector<4x128xi1>
    %32 = vector.broadcast %cst_8 : f32 to vector<4x128xf32>
    %33 = arith.select %31, %29, %32 : vector<4x128xi1>, vector<4x128xf32>
    %34 = tpu.iota {dimensions = array<i32: 0>} : vector<4x128xi32>
    %c-1_i32 = arith.constant -1 : i32
    %35 = vector.broadcast %c-1_i32 : i32 to vector<1x128xi32>
    %36 = arith.cmpi ne, %6, %35 : vector<1x128xi32>
    %37 = arith.andi %36, %13 : vector<1x128xi1>
    %38 = vector.broadcast %6 : vector<1x128xi32> to vector<4x128xi32>
    %39 = arith.cmpi eq, %34, %38 : vector<4x128xi32>
    %40 = vector.broadcast %37 : vector<1x128xi1> to vector<4x128xi1>
    %41 = arith.andi %39, %40 : vector<4x128xi1>
    %42 = arith.extui %41 : vector<4x128xi1> to vector<4x128xi32>
    %43 = arith.sitofp %42 : vector<4x128xi32> to vector<4x128xf32>
    %c0_9 = arith.constant 0 : index
    %c0_10 = arith.constant 0 : index
    %c0_11 = arith.constant 0 : index
    %44 = vector.load %arg5[%c0_9, %c0_10, %c0_11] : memref<1x4x1xf32, #tpu.memory_space<vmem>>, vector<1x4x1xf32>
    %45 = vector.shape_cast %44 : vector<1x4x1xf32> to vector<4x1xf32>
    %cst_12 = arith.constant dense<0.000000e+00> : vector<4xf32>
    %46 = vector.multi_reduction <add>, %33, %cst_12 [1] : vector<4x128xf32> to vector<4xf32>
    %47 = vector.shape_cast %46 : vector<4xf32> to vector<4x1xf32>
    %48 = arith.addf %45, %47 : vector<4x1xf32>
    %c0_13 = arith.constant 0 : index
    %c0_14 = arith.constant 0 : index
    %c0_15 = arith.constant 0 : index
    %49 = vector.load %arg5[%c0_13, %c0_14, %c0_15] : memref<1x4x1xf32, #tpu.memory_space<vmem>>, vector<1x4x1xf32>
    %50 = vector.shape_cast %49 : vector<1x4x1xf32> to vector<4x1xf32>
    %51 = vector.shape_cast %48 : vector<4x1xf32> to vector<1x4x1xf32>
    tpu.vector_store %arg5[%c0_13, %c0_14, %c0_15], %51 {strides = array<i32>} : memref<1x4x1xf32, #tpu.memory_space<vmem>>, vector<1x4x1xf32>,
    %c0_16 = arith.constant 0 : index
    %c0_17 = arith.constant 0 : index
    %c0_18 = arith.constant 0 : index
    %52 = vector.load %arg6[%c0_16, %c0_17, %c0_18] : memref<1x4x1xf32, #tpu.memory_space<vmem>>, vector<1x4x1xf32>
    %53 = vector.shape_cast %52 : vector<1x4x1xf32> to vector<4x1xf32>
    %54 = vector.broadcast %26 : vector<1x128xf32> to vector<4x128xf32>
    %55 = arith.subf %54, %17 : vector<4x128xf32>
    %56 = arith.mulf %43, %55 : vector<4x128xf32>
    %cst_19 = arith.constant dense<0.000000e+00> : vector<4xf32>
    %57 = vector.multi_reduction <add>, %56, %cst_19 [1] : vector<4x128xf32> to vector<4xf32>
    %58 = vector.shape_cast %57 : vector<4xf32> to vector<4x1xf32>
    %59 = arith.addf %53, %58 : vector<4x1xf32>
    %c0_20 = arith.constant 0 : index
    %c0_21 = arith.constant 0 : index
    %c0_22 = arith.constant 0 : index
    %60 = vector.load %arg6[%c0_20, %c0_21, %c0_22] : memref<1x4x1xf32, #tpu.memory_space<vmem>>, vector<1x4x1xf32>
    %61 = vector.shape_cast %60 : vector<1x4x1xf32> to vector<4x1xf32>
    %62 = vector.shape_cast %59 : vector<4x1xf32> to vector<1x4x1xf32>
    tpu.vector_store %arg6[%c0_20, %c0_21, %c0_22], %62 {strides = array<i32>} : memref<1x4x1xf32, #tpu.memory_space<vmem>>, vector<1x4x1xf32>,
    %c0_23 = arith.constant 0 : index
    %c0_24 = arith.constant 0 : index
    %c0_25 = arith.constant 0 : index
    %63 = vector.load %arg7[%c0_23, %c0_24, %c0_25] : memref<1x4x1xf32, #tpu.memory_space<vmem>>, vector<1x4x1xf32>
    %64 = vector.shape_cast %63 : vector<1x4x1xf32> to vector<4x1xf32>
    %cst_26 = arith.constant dense<0.000000e+00> : vector<4xf32>
    %65 = vector.multi_reduction <add>, %43, %cst_26 [1] : vector<4x128xf32> to vector<4xf32>
    %66 = vector.shape_cast %65 : vector<4xf32> to vector<4x1xf32>
    %67 = arith.addf %64, %66 : vector<4x1xf32>
    %c0_27 = arith.constant 0 : index
    %c0_28 = arith.constant 0 : index
    %c0_29 = arith.constant 0 : index
    %68 = vector.load %arg7[%c0_27, %c0_28, %c0_29] : memref<1x4x1xf32, #tpu.memory_space<vmem>>, vector<1x4x1xf32>
    %69 = vector.shape_cast %68 : vector<1x4x1xf32> to vector<4x1xf32>
    %70 = vector.shape_cast %67 : vector<4x1xf32> to vector<1x4x1xf32>
    tpu.vector_store %arg7[%c0_27, %c0_28, %c0_29], %70 {strides = array<i32>} : memref<1x4x1xf32, #tpu.memory_space<vmem>>, vector<1x4x1xf32>,
    return
  }
  func.func @transform_0(%arg0: i32, %arg1: i32, %arg2: i32) -> (i32, i32, i32) {
    %c1_i32 = arith.constant 1 : i32
    %0 = arith.muli %arg1, %c1_i32 : i32
    %1 = arith.addi %0, %arg2 : i32
    %c1_i32_0 = arith.constant 1 : i32
    %2 = arith.minsi %1, %c1_i32_0 : i32
    %c0_i32 = arith.constant 0 : i32
    %c0_i32_1 = arith.constant 0 : i32
    return %arg0, %c0_i32, %2 : i32, i32, i32
  }
  func.func @transform_1(%arg0: i32, %arg1: i32, %arg2: i32) -> (i32, i32, i32) {
    %c1_i32 = arith.constant 1 : i32
    %0 = arith.muli %arg1, %c1_i32 : i32
    %1 = arith.addi %0, %arg2 : i32
    %c1_i32_0 = arith.constant 1 : i32
    %2 = arith.minsi %1, %c1_i32_0 : i32
    %c0_i32 = arith.constant 0 : i32
    %c0_i32_1 = arith.constant 0 : i32
    return %arg0, %c0_i32, %2 : i32, i32, i32
  }
  func.func @transform_2(%arg0: i32, %arg1: i32, %arg2: i32) -> (i32, i32, i32) {
    %c2_i32 = arith.constant 2 : i32
    %0 = arith.muli %arg0, %c2_i32 : i32
    %1 = arith.addi %0, %arg1 : i32
    %c0_i32 = arith.constant 0 : i32
    %c0_i32_0 = arith.constant 0 : i32
    %c0_i32_1 = arith.constant 0 : i32
    return %1, %c0_i32, %c0_i32_0 : i32, i32, i32
  }
  func.func @transform_3(%arg0: i32, %arg1: i32, %arg2: i32) -> (i32, i32, i32) {
    %c2_i32 = arith.constant 2 : i32
    %0 = arith.muli %arg0, %c2_i32 : i32
    %1 = arith.addi %0, %arg1 : i32
    %c0_i32 = arith.constant 0 : i32
    %c0_i32_0 = arith.constant 0 : i32
    %c0_i32_1 = arith.constant 0 : i32
    return %1, %c0_i32, %c0_i32_0 : i32, i32, i32
  }
  func.func @transform_4(%arg0: i32, %arg1: i32, %arg2: i32) -> (i32, i32, i32) {
    %c2_i32 = arith.constant 2 : i32
    %0 = arith.muli %arg0, %c2_i32 : i32
    %1 = arith.addi %0, %arg1 : i32
    %c0_i32 = arith.constant 0 : i32
    %c0_i32_0 = arith.constant 0 : i32
    %c0_i32_1 = arith.constant 0 : i32
    return %1, %c0_i32, %c0_i32_0 : i32, i32, i32
  }
}

</mosaic_0001>

<bundles_post_ra>
// kernel: tpu_custom_call.1
= control target key start
LH: loop header
LB: loop body
LE: loop exit
PB: predicated region body
PF: predicated region fallthrough
CT: control target
= control target key end

     0   :  { %10 = vsyncpa [#allocation3], 0  ;;  %s1121_s0 = inlined_call_operand.hbm [shape: f32[2,4,256], index: 0, kind: input, shape index: {}]   ;;  %s1122_s1 = inlined_call_operand.hbm [shape: s32[2,1,256], index: 1, kind: input, shape index: {}]   ;;  %s1123_s2 = inlined_call_operand.vmem [shape: f32[4,4,1], index: 2, kind: output, shape index: {0}]   ;;  %s1124_s3 = inlined_call_operand.vmem [shape: f32[4,4,1], index: 3, kind: output, shape index: {1}]   ;;  %s1125_s4 = inlined_call_operand.vmem [shape: f32[4,4,1], index: 4, kind: output, shape index: {2}]  }
   0x1   :  { %12 = vsyncpa [#allocation3 + $0x1], 0 }
   0x2   :  { %13 = vsyncpa [#allocation5], 0 }
   0x3   :  { %15 = vsyncpa [#allocation5 + $0x1], 0  ;;  %s887_s15 = smov 0   ;;  %s889_s16 = smov 0  }
   0x4   :  { %s891_s17 = smov 0   ;;  %s893_s18 = smov 0  }
   0x5   :  { %s895_s19 = smov 0   ;;  %s897_s20 = smov 0  }
   0x6   :  { %s899_s21 = smov 0   ;;  %s901_s22 = smov 0  }
   0x7 LB: > { %s615_s23 = sadd.s32 4294967295, %s856_s22   ;;  %s36_s24 = sadd.s32 1, %s848_s20  ;;  %s856_s22 = sphi %s901_s22, %s21_s22   ;;  %s852_s21 = sphi %s899_s21, %s1143_s21   ;;  %s848_s20 = sphi %s897_s20, %s1142_s20   ;;  %s844_s19 = sphi %s895_s19, %s1141_s19   ;;  %s840_s18 = sphi %s893_s18, %s1140_s18   ;;  %s836_s17 = sphi %s891_s17, %s1139_s17   ;;  %s832_s16 = sphi %s889_s16, %s1138_s16   ;;  %s828_s15 = sphi %s887_s15, %s1137_s15  }
   0x8   : > { %p38_p0 = scmp.ge.s32.totalorder %s36_s24, 2  ;;  %s40_s25 = sadd.s32 1, %s852_s21 }
   0x9   : > { %p45_p1 = scmp.lt.s32.totalorder %s848_s20, 1  ;;  %s55_s26 = sadd.s32 1, %s836_s17 }
   0xa   : > { %s1145_s24 = smov (%p38_p0, %s36_s24), 0  ;;  %s1147_s25 = smov (!%p38_p0, %s40_s25), %s852_s21 }
   0xb   : > { %s46_s27 = scalar_select %p45_p1, %s848_s20, 1 }
   0xc   : > { %p42_p2 = scmp.ge.s32.totalorder %s1147_s25, 2  ;;  %p48_p3 = scmp.lt.s32.totalorder %s1145_s24, 1 }
   0xd   : > { %p62_p4 = scmp.ne.s32.totalorder %s836_s17, %s832_s16  ;;  %p63_p5 = scmp.eq.s32.totalorder %s856_s22, 0 }
   0xe   : > { %s1149_s25 = smov (%p42_p2, %s1147_s25), 0  ;;  %p68_p7 = scmp.ne.s32.totalorder %s832_s16, %s828_s15 }
   0xf   : > { %s49_s28 = scalar_select %p48_p3, %s1145_s24, 1 }
  0x10   : > { %s50_s29 = ssub.s32 %s852_s21, %s1149_s25  ;;  %p945_p6 = por %p63_p5, %p62_p4 }
  0x11   : > { %s51_s5 = ssub.s32 %s46_s27, %s49_s28  ;;  %p69_p8 = scmp.eq.s32.totalorder %s615_s23, 0 }
  0x12   : > { %s52_s6 = sor.u32 %s51_s5, %s50_s29  ;;  %p653_p11 = scmp.lt.s32.totalorder %s856_s22, 4 }
  0x13   : > { %p53_p9 = scmp.eq.s32.totalorder %s52_s6, 0  ;;  %p951_p10 = por %p69_p8, %p68_p7 }
  0x14   : > { %s960_s9 = sand.u32 1, %s836_s17   ;;  %s626_s10 = sshll.u32 %s852_s21, 1 }
  0x15   : > { %s1128_s7 = scalar_select %p951_p10, 1, 0 }
  0x16   : > { %s957_s8 = scalar_select %p53_p9, %s836_s17, %s55_s26  }
  0x17   : > { %s625_s11 = sshll.u32 %s960_s9, 2  ;;  %s964_s12 = sadd.s32 %s626_s10, %s46_s27 }
  0x18   : > { %s627_s13 = sshll.u32 %s964_s12, 6  ;;  %s220_s14 = scalar_lea.vmem [#allocation2], %s625_s11 }
  0x19   : > { %s232_s15 = sshll.u32 %s220_s14, 4  ;;  %s970_s29 = scalar_lea.hbm %s1121_s0, %s627_s13  ;;  %s972_s15 = int_to_ptr.vmem [resolvable:$true] %s232_s15 }
  0x1a   : > { %p976_p12 = pnand %p653_p11, %p945_p6  ;;  %s217_s27 = scalar_lea.sflag [#allocation3], %s960_s9 }
  0x1b   : > { %s726_s5 = scalar_lea.hbm %s970_s29, 64  ;;  %s731_s30 = scalar_lea.hbm %s1121_s0, 256 }
  0x1c   : > { %p727_p1 = scmp.ne.s32.totalorder %s970_s29, %s726_s5  ;;  %p728_p2 = pneg %p976_p12 }
  0x1d   : > { %p732_p5 = scmp.lt.u32.totalorder %s970_s29, %s1121_s0  ;;  %p733_p6 = scmp.lt.u32.totalorder %s731_s30, %s726_s5 }
  0x1e   : > { %p729_p3 = pnand %p728_p2, %p727_p1  ;;  %p735_p8 = scmp.lt.u32.totalorder %s726_s5, %s970_s29 }
  0x1f   : > { %p734_p7 = por %p733_p6, %p732_p5 }
  0x20   : > { %p730_p4 = pneg %p729_p3 }
  0x21   : > { %p736_p9 = por %p735_p8, %p734_p7 }
  0x23   : > { %p737_p11 = pnand %p736_p9, %p730_p4 }
  0x25   : > { %740 = shalt.err (!%p737_p11)
}
  0x26   : > { %s741_s14 = scalar_lea.vmem %s972_s15, 64  ;;  %s858_s23 = smov [#allocation2]  }
  0x27   : > { %p742_p1 = scmp.ne.s32.totalorder %s972_s15, %s741_s14  ;;  %s746_s28 = sshll.u32 %s858_s23, 4  ;;  %s747_s28 = int_to_ptr.vmem [resolvable:$false] %s746_s28 }
  0x28   : > { %s748_s6 = scalar_lea.vmem %s747_s28, 128  ;;  %p749_p0 = scmp.lt.s32.totalorder %s972_s15, %s747_s28 }
  0x29   : > { %p744_p3 = pnand %p742_p1, %p728_p2  ;;  %p750_p5 = scmp.lt.s32.totalorder %s748_s6, %s741_s14 }
  0x2b   : > { %p745_p13 = pneg %p744_p3  ;;  %p751_p6 = por %p750_p5, %p749_p0 }
  0x2d   : > { %p752_p7 = pnand %p751_p6, %p745_p13 }
  0x2f   : > { %755 = shalt.err (!%p752_p7)
}
  0x30   : > { %649 = dma.hbm_to_vmem [thread:$0]  (!%p976_p12), %s970_s29, 64, %s972_s15, %s217_s27  }
  0x31   : > { %p1130_p4 = scmp.lt.s32.totalorder %s856_s22, 5  ;;  %p1131_p8 = scmp.ge.s32.totalorder %s856_s22, 1 }
  0x32   : > { %s629_s10 = sshll.u32 %s964_s12, 4  ;;  %s242_s14 = scalar_lea.vmem [#allocation4], %s960_s9 }
  0x33   : > { %p1012_p9 = pnand %p1131_p8, %p1130_p4  ;;  %s1020_s13 = scalar_lea.hbm %s1122_s1, %s629_s10 }
  0x34   : > { %s254_s23 = sshll.u32 %s242_s14, 4  ;;  %s240_s15 = scalar_lea.sflag [#allocation5], %s960_s9  ;;  %s255_s23 = int_to_ptr.vmem [resolvable:$true] %s254_s23 }
  0x35   : > { %s1132_s5 = scalar_select %p1012_p9, 1, 0 }
  0x36   : > { %s756_s29 = scalar_lea.hbm %s1020_s13, 16  ;;  %s761_s28 = scalar_lea.hbm %s1122_s1, 64 }
  0x37   : > { %p757_p13 = scmp.ne.s32.totalorder %s1020_s13, %s756_s29  ;;  %p762_p1 = scmp.lt.u32.totalorder %s1020_s13, %s1122_s1 }
  0x38   : > { %p763_p3 = scmp.lt.u32.totalorder %s761_s28, %s756_s29  ;;  %p765_p6 = scmp.lt.u32.totalorder %s756_s29, %s1020_s13 }
  0x39   : > { %p759_p0 = pnand %p757_p13, %p728_p2 }
  0x3a   : > { %p764_p5 = por %p763_p3, %p762_p1 }
  0x3b   : > { %p760_p11 = pneg %p759_p0 }
  0x3c   : > { %p766_p7 = por %p765_p6, %p764_p5 }
  0x3e   : > { %p767_p4 = pnand %p766_p7, %p760_p11 }
  0x40   : > { %770 = shalt.err (!%p767_p4)
}
  0x41   : > { %s771_s9 = scalar_lea.vmem %s255_s23, 16  ;;  %s859_s30 = smov [#allocation4]  }
  0x42   : > { %p772_p8 = scmp.ne.s32.totalorder %s255_s23, %s771_s9  ;;  %s776_s11 = sshll.u32 %s859_s30, 4  ;;  %s777_s11 = int_to_ptr.vmem [resolvable:$false] %s776_s11 }
  0x43   : > { %s778_s14 = scalar_lea.vmem %s777_s11, 32  ;;  %p779_p10 = scmp.lt.s32.totalorder %s255_s23, %s777_s11 }
  0x44   : > { %p774_p13 = pnand %p772_p8, %p728_p2  ;;  %p780_p9 = scmp.lt.s32.totalorder %s778_s14, %s771_s9 }
  0x46   : > { %p775_p0 = pneg %p774_p13  ;;  %p781_p1 = por %p780_p9, %p779_p10 }
  0x48   : > { %p782_p3 = pnand %p781_p1, %p775_p0 }
  0x4a   : > { %785 = shalt.err (!%p782_p3)
}
  0x4b   : > { %652 = dma.hbm_to_vmem [thread:$0]  (!%p976_p12), %s1020_s13, 16, %s255_s23, %s240_s15  }
  0x4c   : > { %p1133_p11 = scmp.ne.s32.totalorder %s1132_s5, 0 }
  0x4d   : > { %s265_s29 = sand.u32 (!%p1133_p11), 1, %s832_s16   ;;  %p1134_p2 = scmp.ne.s32.totalorder (!%p1133_p11), %s1128_s7, 0 }
  0x4e   : > { %263 = sbr.rel (%p1133_p11) target bundleno = 301 (0x12d), region = 28  ;;  %s631_s12 = sshll.u32 (!%p1133_p11), %s265_s29, 2 }
  0x4f   : > { %s266_s27 = scalar_lea.sflag (!%p1133_p11), [#allocation3], %s265_s29  ;;  %s269_s28 = scalar_lea.vmem (!%p1133_p11), [#allocation2], %s631_s12 }
  0x55   : > { %819 = dma.done.wait (%p1134_p2), %s266_s27, 64  }
  0x56   : > { %821 = vsyncadd (%p1134_p2), %s266_s27, 4294967232  ;;  %s275_s6 = scalar_lea.sflag [#allocation5], %s265_s29  ;;  %s277_s10 = scalar_lea.vmem [#allocation4], %s265_s29 }
  0x57   : > { %823 = dma.done.wait (%p1134_p2), %s275_s6, 16  }
  0x58   : > { %825 = vsyncadd (%p1134_p2), %s275_s6, 4294967280  ;;  %s638_s26 = sshll.u32 %s840_s18, 7  ;;  %v361_v0 = vlaneseq  ;;  %s632_s5 = sshll.u32 %s844_s19, 1  ;;  %vm353_vm1 = vcmask 3072   ;;  %vm369_vm2 = vcmask 1043456   ;;  %v860_v10 = vmov 0.0  }
  0x59   : > { %s363_s13 = ssub.s32 256, %s638_s26  ;;  %s326_s23 = sadd.s32 %s840_s18, %s632_s5  ;;  %v357_v6 = vld [vmem:[%s269_s28] sm:$0xf]  ;;  %v861_v13 = vmov 0  }
  0x5a   : > { %v362_v1 = vand.u32 127, %v361_v0  ;;  %v364_v2 = vstv %s363_s13  ;;  %v394_v3 = vshrl.u32 %v361_v0, 7  ;;  %p327_p10 = scmp.lt.s32.totalorder %s326_s23, 3  ;;  %v358_v7 = vld [vmem:[%s277_s10] sm:$0x1] }
  0x5b   : > { %vm395_vm3 = vcmp.ne.s32.totalorder %v358_v7, 4294967295 }
  0x5c   : > { %v399_v4 = vsub.s32 0, %v394_v3  ;;  %s1151_s23 = smov (!%p327_p10, %s326_s23), 3  ;;  %vm1057_vm0 = vcmp.lt.s32.totalorder %v362_v1, %v364_v2 }
  0x5d   : > { %s1061_s7 = sshll.u32 %s1151_s23, 2  ;;  %v368_v8 = vsel %vm1057_vm0, %v357_v6, 0.0  ;;  %vm396_vm4 = vmand %vm395_vm3, %vm1057_vm0 }
  0x5e   : > { %s1067_s18 = scalar_lea.vmem %s1123_s2, %s1061_s7  ;;  %v400_v9 = vrot.slane %v358_v7, %v399_v4  ;;  %v370_v11 = vsel %vm369_vm2, %v368_v8, -inf  ;;  %v402_v14 = vsel %vm396_vm4, 1, %v861_v13  ;;  %s346_s11 = scalar_lea.vmem %s1125_s4, %s1061_s7 }
  0x5f   : > { %354 = vst.msk [vmem:[%s1067_s18] sm:$0xf] %vm353_vm1, %v860_v10  ;;  %v371_v12 = vrot.slane %v370_v11, 4  ;;  %v406_v15 = vrot.slane %v402_v14, %v399_v4  ;;  %s338_s12 = scalar_lea.vmem %s1124_s3, %s1061_s7  ;;  %356 = vst.msk [vmem:[%s346_s11] sm:$0xf] %vm353_vm1, %v860_v10 }
  0x60   : > { %vm401_vm5 = vcmp.eq.s32.totalorder %v394_v3, %v400_v9  ;;  %355 = vst.msk [vmem:[%s338_s12] sm:$0xf] %vm353_vm1, %v860_v10 }
  0x61   : > { %v372_v16 = vmax.f32 %v370_v11, %v371_v12  ;;  %vm407_vm6 = vcmp.eq.s32.totalorder %v406_v15, 1 }
  0x62   : > { %vm408_vm7 = vmand %vm401_vm5, %vm407_vm6 }
  0x63   : > { %v373_v17 = vrot.slane %v372_v16, 2  ;;  %v639_v18 = vsel %vm408_vm7, 1.0, %v860_v10 }
  0x64   : > { %v427_v20 = vsel %vm369_vm2, %v639_v18, 0.0 }
  0x65   : > { %v374_v19 = vmax.f32 %v372_v16, %v373_v17  ;;  %428 = vadd.xlane.f32.xlu1 %v427_v20 }
  0x66   : > { %v426_v43 = vld [vmem:[%s346_s11] sm:$0xf] }
  0x67   : > { %v375_v21 = vrot.slane %v374_v19, 1  ;;  %v411_v46 = vld [vmem:[%s1067_s18] sm:$0xf] }
  0x68   : > { %v418_v49 = vld [vmem:[%s338_s12] sm:$0xf] }
  0x69   : > { %v376_v22 = vmax.f32 %v374_v19, %v375_v21 }
  0x6b   : > { %v377_v23 = vsub.f32 %v368_v8, %v376_v22 }
  0x6d   : > { %v378_v24 = vmul.f32 1.442695, %v377_v23 }
  0x6f   : > { %720 = vpow2.f32 %v378_v24 }
  0x79   : > { %v721_v25 = vpop.eup %720 }
  0x7a   : > { %v380_v26 = vsel %vm369_vm2, %v721_v25, 0.0 }
  0x7b   : > { %v381_v27 = vrot.slane %v380_v26, 4 }
  0x7d   : > { %v382_v28 = vadd.f32 %v381_v27, %v380_v26 }
  0x7f   : > { %v383_v29 = vrot.slane %v382_v28, 2 }
  0x81   : > { %v384_v30 = vadd.f32 %v383_v29, %v382_v28 }
  0x83   : > { %v385_v31 = vrot.slane %v384_v30, 1 }
  0x85   : > { %v386_v32 = vadd.f32 %v385_v31, %v384_v30 }
  0x87   : > { %722 = vrcp.f32 %v386_v32 }
  0x88   : > { %724 = vlog2.f32 %v386_v32 }
  0x91   : > { %v723_v33 = vpop.eup %722 }
  0x92   : > { %v725_v34 = vpop.eup %724  ;;  %v391_v35 = vmul.f32 %v723_v33, %v721_v25 }
  0x93   : > { %v388_v36 = vmul.f32 0.6931472, %v725_v34 }
  0x94   : > { %v392_v37 = vsel %vm1057_vm0, %v391_v35, 0.0 }
  0x95   : > { %v412_v38 = vsel %vm369_vm2, %v392_v37, 0.0  ;;  %v389_v39 = vadd.f32 %v388_v36, %v376_v22 }
  0x96   : > { %413 = vadd.xlane.f32.xlu0 %v412_v38 }
  0x97   : > { %v419_v40 = vsub.f32 %v389_v39, %v368_v8 }
  0x99   : > { %v420_v41 = vmul.f32 %v639_v18, %v419_v40 }
  0x9b   : > { %v421_v42 = vsel %vm369_vm2, %v420_v41, 0.0 }
  0x9c   : > { %422 = vadd.xlane.f32.xlu0 %v421_v42 }
  0xf2   : > { %v429_v44 = vpop.xlane.xlu1 %428 }
  0xf3   : > { %v430_v45 = vadd.f32 %v429_v44, %v426_v43 }
  0xf5   : > { %431 = vst.msk [vmem:[%s346_s11] sm:$0xf] %vm353_vm1, %v430_v45 }
 0x123   : > { %v414_v47 = vpop.xlane.xlu0 %413 }
 0x124   : > { %v415_v48 = vadd.f32 %v414_v47, %v411_v46 }
 0x126   : > { %417 = vst.msk [vmem:[%s1067_s18] sm:$0xf] %vm353_vm1, %v415_v48 }
 0x129   : > { %v423_v50 = vpop.xlane.xlu0 %422 }
 0x12a   : > { %v424_v51 = vadd.f32 %v423_v50, %v418_v49 }
 0x12c   : > { %425 = vst.msk [vmem:[%s338_s12] sm:$0xf] %vm353_vm1, %v424_v51 }
 0x12d PF: > { %s21_s22 = sadd.s32 1, %s856_s22   ;;  %s1137_s15 = smov %s832_s16 }
 0x12e   : > { %p18_p12 = scmp.ge.s32.totalorder %s21_s22, 6   ;;  %s1138_s16 = smov %s836_s17 }
 0x12f   : > { %s1139_s17 = smov %s957_s8  ;;  %s1140_s18 = smov %s848_s20 }
 0x130   : > { %s1141_s19 = smov %s852_s21  ;;  %s1142_s20 = smov %s1145_s24 }
 0x131   : > { %s1143_s21 = smov %s1149_s25  ;;  %20 = sbr.rel (!%p18_p12) target bundleno = 7 (0x7), region = 109 }
 0x138   :  { %497 = vsyncpa [#allocation3], 1 }
 0x139   :  { %499 = vsyncpa [#allocation3 + $0x1], 1 }
 0x13a   :  { %500 = vsyncpa [#allocation5], 1 }
 0x13b   :  { %502 = vsyncpa [#allocation5 + $0x1], 1 }

</bundles_post_ra>
